<compile_context>
chip_gen: v5e
topology: v5e:2x2
jax: 0.10.0
libtpu: 0.0.40
codegen_flags: <defaults>
</compile_context>

<pallas_src>
import functools

import jax
import jax.numpy as jnp
from jax.experimental import pallas as pl
from jax.experimental.pallas import tpu as pltpu


def _round_up(x, m):
    return ((x + m - 1) // m) * m


def _focal_loss_kernel(logits_ref, labels_ref, out_ref, *, alpha, gamma, n_total):
    i = pl.program_id(0)

    @pl.when(i == 0)
    def _init():
        out_ref[...] = jnp.zeros_like(out_ref)

    x = logits_ref[...].astype(jnp.float32)          # (C, TN)  classes on sublanes
    lbl = labels_ref[...]                            # (1, TN)  int32 (-1 == padding)
    c, tn = x.shape

    # Numerically-stable softmax pieces over the class (sublane) axis.
    m = jnp.max(x, axis=0, keepdims=True)            # (1, TN)
    e = jnp.exp(x - m)                               # (C, TN)
    denom = jnp.sum(e, axis=0, keepdims=True)        # (1, TN)

    # p_t: only the label's exp term survives -> never materialize full probs.
    cls_idx = jax.lax.broadcasted_iota(jnp.int32, (c, tn), 0)
    e_t = jnp.sum(jnp.where(cls_idx == lbl, e, 0.0), axis=0, keepdims=True)  # (1, TN)
    # Exact reciprocal: approx=True (EUP vrcp) would exceed the 1e-5 rtol check.
    pt = e_t * pl.reciprocal(denom, approx=False)    # (1, TN)

    # alpha_t = alpha where label == 1 else (1 - alpha)   (matches PyTorch ref)
    alpha_t = jnp.where(lbl == 1, jnp.float32(alpha), jnp.float32(1.0 - alpha))

    one_m = 1.0 - pt
    g = float(gamma)
    if g == 2.0:                                     # fast path: a single VPU multiply
        focal = one_m * one_m
    elif g.is_integer() and 0.0 <= g <= 8.0:         # small integer gamma: repeated mul
        focal = jnp.ones_like(one_m)
        for _ in range(int(g)):
            focal = focal * one_m
    else:                                            # general (float) gamma
        focal = jnp.power(one_m, jnp.float32(g))

    loss = -alpha_t * focal * jnp.log(pt + 1e-8)     # (1, TN)
    loss = jnp.where(lbl >= 0, loss, 0.0)            # mask padded columns

    out_ref[...] += jnp.sum(loss)                    # accumulate into resident block

    @pl.when(i == pl.num_programs(0) - 1)
    def _finalize():
        out_ref[...] = out_ref[...] * jnp.float32(1.0 / n_total)  # mean over true N


def weighted_focal_loss(logits, labels, *, class_weights=None, alpha=0.65,
                        gamma=2.0, block_cols=4096):
    # NOTE: class_weights is stored but unused in the PyTorch forward; kept for parity.
    del class_weights
    n, c = logits.shape

    # Lane-dense layout plumbing (no compute): batch -> lanes, classes -> sublanes.
    logits_t = jnp.transpose(logits)                        # (C, N), keeps input dtype
    labels_row = labels.astype(jnp.int32).reshape(1, n)     # (1, N)

    tn = min(_round_up(int(block_cols), 128), _round_up(n, 128))
    n_pad = _round_up(n, tn)
    if n_pad != n:
        logits_t = jnp.pad(logits_t, ((0, 0), (0, n_pad - n)))
        labels_row = jnp.pad(labels_row, ((0, 0), (0, n_pad - n)), constant_values=-1)

    grid = (n_pad // tn,)
    kernel = functools.partial(_focal_loss_kernel, alpha=float(alpha),
                               gamma=float(gamma), n_total=int(n))

    itemsize = jnp.dtype(logits.dtype).itemsize
    cost = pl.CostEstimate(
        flops=int(n) * (6 * c + 12),
        transcendentals=int(n) * (c + 1),
        bytes_accessed=int(n) * (c * itemsize + 4) + 4,
    )

    out = pl.pallas_call(
        kernel,
        out_shape=jax.ShapeDtypeStruct((1, 1), jnp.float32),
        grid=grid,
        in_specs=[
            pl.BlockSpec((c, tn), lambda i: (0, i)),   # logits tile, classes on sublanes
            pl.BlockSpec((1, tn), lambda i: (0, i)),   # labels tile
        ],
        out_specs=pl.BlockSpec((1, 1), lambda i: (0, 0)),  # resident scalar accumulator
        compiler_params=pltpu.CompilerParams(
            dimension_semantics=("arbitrary",),        # batch axis is a reduction
            vmem_limit_bytes=32 * 1024 * 1024,         # explicit budget, safe on v5e/v6e/v7x
        ),
        cost_estimate=cost,
    )(logits_t, labels_row)
    return out[0, 0]


def _reference(logits, labels, alpha=0.65, gamma=2.0):
    probs = jax.nn.softmax(logits.astype(jnp.float32), axis=1)
    one_hot = jax.nn.one_hot(labels, logits.shape[1], dtype=jnp.float32)
    pt = jnp.sum(probs * one_hot, axis=1)
    alpha_t = jnp.where(labels == 1, alpha, 1.0 - alpha)
    loss = -alpha_t * (1.0 - pt) ** gamma * jnp.log(pt + 1e-8)
    return jnp.mean(loss)


if __name__ == "__main__":
    key = jax.random.PRNGKey(0)
    k1, k2, k3, k4 = jax.random.split(key, 4)

    # Case 1: small batch (single tile, padded columns masked out).
    N, C = 8, 4
    logits = jax.random.normal(k1, (N, C), dtype=jnp.float32)
    labels = jax.random.randint(k2, (N,), 0, C, dtype=jnp.int32)
    class_weights = jnp.linspace(0.5, 2.0, C, dtype=jnp.float32)  # unused in forward

    out = weighted_focal_loss(logits, labels, class_weights=class_weights,
                              alpha=0.65, gamma=2.0)
    out = jax.block_until_ready(out)
    ref = _reference(logits, labels, alpha=0.65, gamma=2.0)
    assert jnp.allclose(out, ref, rtol=1e-5, atol=1e-6), (out, ref)

    # Case 2: multi-tile grid (forces accumulation across steps + last-tile mask).
    N2 = 300
    logits2 = jax.random.normal(k3, (N2, C), dtype=jnp.float32)
    labels2 = jax.random.randint(k4, (N2,), 0, C, dtype=jnp.int32)
    out2 = weighted_focal_loss(logits2, labels2, class_weights=class_weights,
                               alpha=0.65, gamma=2.0, block_cols=128)
    out2 = jax.block_until_ready(out2)
    ref2 = _reference(logits2, labels2, alpha=0.65, gamma=2.0)
    assert jnp.allclose(out2, ref2, rtol=1e-5, atol=1e-6), (out2, ref2)

    print("KERNEL_OK")
</pallas_src>

<mosaic_0001>
module attributes {stable_mosaic.version = 11 : i64} {
  func.func @_focal_loss_kernel(%arg0: i32, %arg1: memref<4x128xf32, #tpu.memory_space<vmem>>, %arg2: memref<1x128xi32, #tpu.memory_space<vmem>>, %arg3: memref<1x1xf32, #tpu.memory_space<vmem>>) attributes {dimension_semantics = [#tpu.dimension_semantics<arbitrary>], iteration_bounds = array<i64: 1>, scalar_prefetch = 0 : i64, scratch_operands = 0 : i64, tpu.core_type = #tpu.core_type<tc>, window_params = [{transform_indices = @transform_0, window_bounds = array<i64: 4, 128>}, {transform_indices = @transform_1, window_bounds = array<i64: 1, 128>}, {pipeline_mode = #tpu.pipeline_mode<synchronous>, transform_indices = @transform_2, window_bounds = array<i64: 1, 1>}]} {
    %c0_i32 = arith.constant 0 : i32
    %0 = arith.cmpi eq, %arg0, %c0_i32 : i32
    %1 = arith.extui %0 : i1 to i32
    %c0_i32_0 = arith.constant 0 : i32
    %2 = arith.cmpi ne, %1, %c0_i32_0 : i32
    scf.if %2 {
      %cst_21 = arith.constant 0.000000e+00 : f32
      %51 = vector.broadcast %cst_21 : f32 to vector<1x1xf32>
      %c0_22 = arith.constant 0 : index
      %c0_23 = arith.constant 0 : index
      %52 = vector.load %arg3[%c0_22, %c0_23] : memref<1x1xf32, #tpu.memory_space<vmem>>, vector<1x1xf32>
      tpu.vector_store %arg3[%c0_22, %c0_23], %51 {strides = array<i32>} : memref<1x1xf32, #tpu.memory_space<vmem>>, vector<1x1xf32>,
    } else {
    }
    %c0 = arith.constant 0 : index
    %c0_1 = arith.constant 0 : index
    %3 = vector.load %arg1[%c0, %c0_1] : memref<4x128xf32, #tpu.memory_space<vmem>>, vector<4x128xf32>
    %c0_2 = arith.constant 0 : index
    %c0_3 = arith.constant 0 : index
    %4 = vector.load %arg2[%c0_2, %c0_3] : memref<1x128xi32, #tpu.memory_space<vmem>>, vector<1x128xi32>
    %cst = arith.constant dense<0xFF800000> : vector<128xf32>
    %5 = vector.multi_reduction <maximumf>, %3, %cst [0] : vector<4x128xf32> to vector<128xf32>
    %6 = vector.shape_cast %5 : vector<128xf32> to vector<1x128xf32>
    %7 = vector.broadcast %6 : vector<1x128xf32> to vector<4x128xf32>
    %8 = arith.subf %3, %7 : vector<4x128xf32>
    %9 = math.exp %8 : vector<4x128xf32>
    %cst_4 = arith.constant dense<0.000000e+00> : vector<128xf32>
    %10 = vector.multi_reduction <add>, %9, %cst_4 [0] : vector<4x128xf32> to vector<128xf32>
    %11 = vector.shape_cast %10 : vector<128xf32> to vector<1x128xf32>
    %12 = tpu.iota {dimensions = array<i32: 0>} : vector<4x128xi32>
    %13 = vector.broadcast %4 : vector<1x128xi32> to vector<4x128xi32>
    %14 = arith.cmpi eq, %12, %13 : vector<4x128xi32>
    %cst_5 = arith.constant 0.000000e+00 : f32
    %15 = vector.broadcast %cst_5 : f32 to vector<4x128xf32>
    %16 = arith.select %14, %9, %15 : vector<4x128xi1>, vector<4x128xf32>
    %cst_6 = arith.constant dense<0.000000e+00> : vector<128xf32>
    %17 = vector.multi_reduction <add>, %16, %cst_6 [0] : vector<4x128xf32> to vector<128xf32>
    %18 = vector.shape_cast %17 : vector<128xf32> to vector<1x128xf32>
    %19 = tpu.reciprocal %11 : vector<1x128xf32> -> vector<1x128xf32>
    %20 = arith.mulf %18, %19 : vector<1x128xf32>
    %c1_i32 = arith.constant 1 : i32
    %21 = vector.broadcast %c1_i32 : i32 to vector<1x128xi32>
    %22 = arith.cmpi eq, %4, %21 : vector<1x128xi32>
    %cst_7 = arith.constant 6.500000e-01 : f32
    %cst_8 = arith.constant 3.500000e-01 : f32
    %23 = vector.broadcast %cst_7 : f32 to vector<1x128xf32>
    %24 = vector.broadcast %cst_8 : f32 to vector<1x128xf32>
    %25 = arith.select %22, %23, %24 : vector<1x128xi1>, vector<1x128xf32>
    %cst_9 = arith.constant 1.000000e+00 : f32
    %26 = vector.broadcast %cst_9 : f32 to vector<1x128xf32>
    %27 = arith.subf %26, %20 : vector<1x128xf32>
    %28 = arith.mulf %27, %27 : vector<1x128xf32>
    %cst_10 = arith.constant 0.000000e+00 : f32
    %29 = vector.broadcast %cst_10 : f32 to vector<1x128xf32>
    %30 = arith.subf %29, %25 : vector<1x128xf32>
    %31 = arith.mulf %30, %28 : vector<1x128xf32>
    %cst_11 = arith.constant 9.99999993E-9 : f32
    %32 = vector.broadcast %cst_11 : f32 to vector<1x128xf32>
    %33 = arith.addf %20, %32 : vector<1x128xf32>
    %34 = math.log %33 : vector<1x128xf32>
    %35 = arith.mulf %31, %34 : vector<1x128xf32>
    %c0_i32_12 = arith.constant 0 : i32
    %36 = vector.broadcast %c0_i32_12 : i32 to vector<1x128xi32>
    %37 = arith.cmpi sge, %4, %36 : vector<1x128xi32>
    %cst_13 = arith.constant 0.000000e+00 : f32
    %38 = vector.broadcast %cst_13 : f32 to vector<1x128xf32>
    %39 = arith.select %37, %35, %38 : vector<1x128xi1>, vector<1x128xf32>
    %c0_14 = arith.constant 0 : index
    %c0_15 = arith.constant 0 : index
    %40 = vector.load %arg3[%c0_14, %c0_15] : memref<1x1xf32, #tpu.memory_space<vmem>>, vector<1x1xf32>
    %41 = vector.shape_cast %39 : vector<1x128xf32> to vector<1x1x128xf32>
    %cst_16 = arith.constant dense<0.000000e+00> : vector<1xf32>
    %42 = vector.multi_reduction <add>, %41, %cst_16 [1, 2] : vector<1x1x128xf32> to vector<1xf32>
    %43 = vector.shape_cast %42 : vector<1xf32> to vector<1x1x1xf32>
    %44 = vector.extract %43[0, 0, 0] : f32 from vector<1x1x1xf32>
    %45 = vector.broadcast %44 : f32 to vector<1x1xf32>
    %46 = arith.addf %40, %45 : vector<1x1xf32>
    %c0_17 = arith.constant 0 : index
    %c0_18 = arith.constant 0 : index
    %47 = vector.load %arg3[%c0_17, %c0_18] : memref<1x1xf32, #tpu.memory_space<vmem>>, vector<1x1xf32>
    tpu.vector_store %arg3[%c0_17, %c0_18], %46 {strides = array<i32>} : memref<1x1xf32, #tpu.memory_space<vmem>>, vector<1x1xf32>,
    %c0_i32_19 = arith.constant 0 : i32
    %48 = arith.cmpi eq, %arg0, %c0_i32_19 : i32
    %49 = arith.extui %48 : i1 to i32
    %c0_i32_20 = arith.constant 0 : i32
    %50 = arith.cmpi ne, %49, %c0_i32_20 : i32
    scf.if %50 {
      %c0_21 = arith.constant 0 : index
      %c0_22 = arith.constant 0 : index
      %51 = vector.load %arg3[%c0_21, %c0_22] : memref<1x1xf32, #tpu.memory_space<vmem>>, vector<1x1xf32>
      %cst_23 = arith.constant 1.250000e-01 : f32
      %52 = vector.broadcast %cst_23 : f32 to vector<1x1xf32>
      %53 = arith.mulf %51, %52 : vector<1x1xf32>
      %c0_24 = arith.constant 0 : index
      %c0_25 = arith.constant 0 : index
      %54 = vector.load %arg3[%c0_24, %c0_25] : memref<1x1xf32, #tpu.memory_space<vmem>>, vector<1x1xf32>
      tpu.vector_store %arg3[%c0_24, %c0_25], %53 {strides = array<i32>} : memref<1x1xf32, #tpu.memory_space<vmem>>, vector<1x1xf32>,
    } else {
    }
    return
  }
  func.func @transform_0(%arg0: i32) -> (i32, i32) {
    %c0_i32 = arith.constant 0 : i32
    %c0_i32_0 = arith.constant 0 : i32
    return %c0_i32, %arg0 : i32, i32
  }
  func.func @transform_1(%arg0: i32) -> (i32, i32) {
    %c0_i32 = arith.constant 0 : i32
    %c0_i32_0 = arith.constant 0 : i32
    return %c0_i32, %arg0 : i32, i32
  }
  func.func @transform_2(%arg0: i32) -> (i32, i32) {
    %c0_i32 = arith.constant 0 : i32
    %c0_i32_0 = arith.constant 0 : i32
    %c0_i32_1 = arith.constant 0 : i32
    return %c0_i32, %c0_i32_0 : i32, i32
  }
}

</mosaic_0001>

<bundles_post_ra>
// kernel: tpu_custom_call.1
= control target key start
LH: loop header
LB: loop body
LE: loop exit
PB: predicated region body
PF: predicated region fallthrough
CT: control target
= control target key end

     0   :  { %7 = vsyncpa [#allocation3], 0  ;;  %s272_s0 = inlined_call_operand.hbm [shape: f32[4,128], index: 0, kind: input, shape index: {}]   ;;  %s273_s1 = inlined_call_operand.hbm [shape: s32[1,128], index: 1, kind: input, shape index: {}]   ;;  %s274_s2 = inlined_call_operand.hbm [shape: f32[1,1], index: 2, kind: output, shape index: {}]  }
   0x1   :  { %8 = vsyncpa [#allocation6], 0 }
   0x2   :  { %9 = vsyncpa [#allocation4], 0  ;;  %s15_s11 = sshll.u32 %s272_s0, 4  ;;  %s237_s12 = smov [#allocation2]   ;;  %s16_s11 = int_to_ptr.hbm [resolvable:$true] %s15_s11 }
   0x3   :  { %s17_s13 = sshll.u32 %s237_s12, 4  ;;  %s26_s16 = sshll.u32 %s273_s1, 4  ;;  %s18_s13 = int_to_ptr.vmem [resolvable:$true] %s17_s13  ;;  %s27_s16 = int_to_ptr.hbm [resolvable:$true] %s26_s16 }
   0x4   :  { %20 = dma.hbm_to_vmem [thread:$0]  %s16_s11, 64, %s18_s13, [#allocation3]  }
   0x5   :  { %s238_s17 = smov [#allocation5]  }
   0x6   :  { %s28_s18 = sshll.u32 %s238_s17, 4  ;;  %s29_s18 = int_to_ptr.vmem [resolvable:$true] %s28_s18 }
   0x7   :  { %31 = dma.hbm_to_vmem [thread:$0]  %s27_s16, 16, %s29_s18, [#allocation6]  }
   0x8   :  { %231 = dma.done.wait [#allocation3], 64  }
   0x9   :  { %232 = vsyncadd [#allocation3], 4294967232 }
   0xa   :  { %233 = dma.done.wait [#allocation6], 16  }
   0xb   :  { %234 = vsyncadd [#allocation6], 4294967280  ;;  %vm48_vm0 = vcmask 1043456   ;;  %v46_v0 = vld [vmem:[#allocation2] sm:$0xf]  ;;  %v66_v9 = vlaneseq  ;;  %vm106_vm8 = vcmask 1040384  }
   0xc   :  { %v49_v1 = vsel %vm48_vm0, %v46_v0, -inf  ;;  %v152_v12 = vld [vmem:[#allocation5] ss:$0 sm:$0xff]  ;;  %v239_v41 = vmov 0.35   ;;  %vm44_vm9 = vcmask 0  }
   0xd   :  { %v50_v2 = vrot.slane %v49_v1, 4  ;;  %v67_v11 = vshrl.u32 %v66_v9, 7  ;;  %v47_v35 = vld [vmem:[#allocation5] sm:$0x1]  ;;  %v240_v53 = vmov 0.0   ;;  %s241_s1 = smov [#allocation7]  }
   0xe   :  { %vm93_vm6 = vcmp.eq.s32.totalorder %v47_v35, 1  ;;  %vm103_vm7 = vcmp.ge.s32.totalorder %v47_v35, 0  ;;  %45 = vst.msk [vmem:[#allocation7] sm:$0x1] %vm44_vm9, %v240_v53  ;;  %s132_s19 = sshll.u32 %s241_s1, 4  ;;  %s134_s22 = sshll.u32 %s274_s2, 4  ;;  %s133_s19 = int_to_ptr.vmem [resolvable:$true] %s132_s19  ;;  %s135_s22 = int_to_ptr.hbm [resolvable:$true] %s134_s22 }
   0xf   :  { %v51_v3 = vmax.f32 %v49_v1, %v50_v2  ;;  %vm69_vm1 = vcmp.eq.s32.totalorder %v67_v11, %v152_v12  ;;  %v94_v42 = vsel %vm93_vm6, 0.65, %v239_v41 }
  0x10   :  { %v97_v46 = vsub.f32 0.0, %v94_v42 }
  0x11   :  { %v52_v4 = vrot.slane %v51_v3, 2 }
  0x13   :  { %v53_v5 = vmax.f32 %v51_v3, %v52_v4 }
  0x15   :  { %v54_v6 = vrot.slane %v53_v5, 1  ;;  %v105_v61 = vld [vmem:[#allocation7] sm:$0x1] }
  0x17   :  { %v55_v7 = vmax.f32 %v53_v5, %v54_v6 }
  0x19   :  { %v56_v8 = vsub.f32 %v46_v0, %v55_v7 }
  0x1b   :  { %v57_v10 = vmul.f32 1.442695, %v56_v8 }
  0x1d   :  { %153 = vpow2.f32 %v57_v10 }
  0x23   :  { %v154_v13 = vpop.eup %153 }
  0x24   :  { %v59_v14 = vsel %vm48_vm0, %v154_v13, 0.0  ;;  %v70_v15 = vsel %vm69_vm1, %v154_v13, 0.0 }
  0x25   :  { %v60_v16 = vrot.slane %v59_v14, 4  ;;  %v71_v17 = vsel %vm48_vm0, %v70_v15, 0.0 }
  0x26   :  { %v72_v20 = vrot.slane %v71_v17, 4 }
  0x27   :  { %v61_v18 = vadd.f32 %v60_v16, %v59_v14 }
  0x28   :  { %v73_v23 = vadd.f32 %v72_v20, %v71_v17 }
  0x29   :  { %v62_v19 = vrot.slane %v61_v18, 2 }
  0x2a   :  { %v74_v25 = vrot.slane %v73_v23, 2 }
  0x2b   :  { %v63_v21 = vadd.f32 %v62_v19, %v61_v18 }
  0x2c   :  { %v75_v26 = vadd.f32 %v74_v25, %v73_v23 }
  0x2d   :  { %v64_v22 = vrot.slane %v63_v21, 1 }
  0x2e   :  { %v76_v29 = vrot.slane %v75_v26, 1 }
  0x2f   :  { %v65_v24 = vadd.f32 %v64_v22, %v63_v21 }
  0x30   :  { %v77_v36 = vadd.f32 %v76_v29, %v75_v26 }
  0x31   :  { %155 = vrcp.f32 %v65_v24  ;;  %v89_v30 = vand.u32 2147483648, %v65_v24  ;;  %vm83_vm2 = vweird.f32 %v65_v24  ;;  %v87_v32 = vand.u32 2147483647, %v65_v24 }
  0x33   :  { %v90_v34 = vor.u32 1.1754944e-38, %v89_v30  ;;  %vm88_vm5 = vcmp.eq.f32.partialorder %v87_v32, 8.507059e+37 }
  0x37   :  { %v156_v27 = vpop.eup %155 }
  0x38   :  { %v79_v28 = vmul.f32 %v156_v27, %v65_v24  ;;  %vm84_vm3 = vweird.f32 %v156_v27 }
  0x39   :  { %vm85_vm4 = vmor %vm83_vm2, %vm84_vm3 }
  0x3a   :  { %v80_v31 = vsub.f32 1.0, %v79_v28 }
  0x3c   :  { %v81_v33 = vmul.f32 %v156_v27, %v80_v31 }
  0x3e   :  { %v82_v37 = vadd.f32 %v156_v27, %v81_v33 }
  0x40   :  { %v86_v38 = vsel %vm85_vm4, %v156_v27, %v82_v37 }
  0x41   :  { %v91_v39 = vsel %vm88_vm5, %v90_v34, %v86_v38 }
  0x42   :  { %v92_v40 = vmul.f32 %v91_v39, %v77_v36 }
  0x44   :  { %v95_v43 = vsub.f32 1.0, %v92_v40  ;;  %v99_v44 = vadd.f32 1e-08, %v92_v40 }
  0x46   :  { %157 = vlog2.f32 %v99_v44  ;;  %v96_v45 = vmul.f32 %v95_v43, %v95_v43 }
  0x48   :  { %v98_v47 = vmul.f32 %v97_v46, %v96_v45 }
  0x4c   :  { %v158_v48 = vpop.eup %157 }
  0x4d   :  { %v101_v49 = vmul.f32 0.6931472, %v158_v48 }
  0x4f   :  { %v102_v50 = vmul.f32 %v101_v49, %v98_v47 }
  0x51   :  { %v104_v51 = vsel %vm103_vm7, %v102_v50, 0.0 }
  0x52   :  { %v107_v52 = vsel %vm106_vm8, %v104_v51, 0.0 }
  0x53   :  { %108 = vadd.xlane.f32.xlu0 %v107_v52 }
  0xc6   :  { %v109_v54 = vpop.xlane.xlu0 %108 }
  0xc7   :  { %v110_v55 = vrot.slane %v109_v54, 4 }
  0xc9   :  { %v111_v56 = vadd.f32 %v110_v55, %v109_v54 }
  0xcb   :  { %v112_v57 = vrot.slane %v111_v56, 2 }
  0xcd   :  { %v113_v58 = vadd.f32 %v112_v57, %v111_v56 }
  0xcf   :  { %v114_v59 = vrot.slane %v113_v58, 1 }
  0xd1   :  { %v115_v60 = vadd.f32 %v114_v59, %v113_v58 }
  0xd3   :  { %145 = vpush %v115_v60 }
 0x104   :  { %s146_s0 = spop %145 }
 0x105   :  { %v117_v62 = vstv %s146_s0 }
 0x106   :  { %v118_v63 = vadd.f32 %v117_v62, %v105_v61 }
 0x108   :  { %120 = vst.msk [vmem:[#allocation7] sm:$0x1] %vm44_vm9, %v118_v63 }
 0x10f   :  { %v124_v0 = vld [vmem:[#allocation7] sm:$0x1] }
 0x110   :  { %v125_v1 = vmul.f32 0.125, %v124_v0 }
 0x112   :  { %126 = vst.msk [vmem:[#allocation7] sm:$0x1] %vm44_vm9, %v125_v1 }
 0x113   :  { %137 = dma.vmem_to_hbm [thread:$0]  %s133_s19, 16, %s135_s22, [#allocation4]  }
 0x114   :  { %235 = dma.done.wait [#allocation4], 16  }
 0x115   :  { %236 = vsyncadd [#allocation4], 4294967280 }
 0x116   :  { %142 = vsyncpa [#allocation3], 1 }
 0x117   :  { %143 = vsyncpa [#allocation6], 1 }
 0x118   :  { %144 = vsyncpa [#allocation4], 1 }

</bundles_post_ra>
